<compile_context>
chip_gen: v6e
topology: v6e:2x2x1
jax: 0.10.0
libtpu: 0.0.40
codegen_flags: <defaults>
</compile_context>

<pallas_src>
import jax
import jax.numpy as jnp
from jax.experimental import pallas as pl
from jax.experimental.pallas import tpu as pltpu

IN_DIM = 28 * 28        # 784
HID = 600               # self.NU
HID_PAD = 640           # next multiple of 128 (lane-aligned hidden width)
OUT_DIM = 1
NEG_SLOPE = 0.01        # nn.LeakyReLU() default
TB_MAX = 512            # batch-tile rows (fits all VMEM budgets incl. v5e/v7x)


def _round_up(x, m):
    return (x + m - 1) // m * m


def net_d_kernel(x_ref, w1_ref, b1_ref, w2_ref, b2_ref, out_ref):
    # Layer 1: bf16 MXU matmul, f32 accumulation; bias + LeakyReLU on the VPU.
    h = jnp.dot(x_ref[...], w1_ref[...], preferred_element_type=jnp.float32)
    h = h + b1_ref[...]
    h = jnp.where(h > 0, h, NEG_SLOPE * h)

    # Layer 2 (600 -> 1): 1-wide output, so skip the MXU entirely and do a
    # broadcast-multiply + lane reduction (VPU + XLU). Padded columns of h and
    # w2 are zero, so the reduction over HID_PAD equals the reduction over HID.
    z = jnp.sum(h * w2_ref[...], axis=-1, keepdims=True) + b2_ref[...]

    # Sigmoid: exp + approximate reciprocal both ride the otherwise-idle EUP.
    out_ref[...] = pl.reciprocal(1.0 + jnp.exp(-z), approx=True).astype(out_ref.dtype)


def net_d_forward(x, w1, b1, w2, b2):
    """x: (B, 1, 28, 28) or (B, 784) float32.
    w1: (784, 600), b1: (600,), w2: (600, 1), b2: (1,)  (stored as [in, out]).
    Returns (B, 1) float32, matching torch Net_D.forward."""
    x2 = x.reshape(-1, IN_DIM)
    B = x2.shape[0]

    # Pad hidden dim to 640, cast matmul inputs to bf16, keep bias/w2 in f32.
    w1p = jnp.zeros((IN_DIM, HID_PAD), jnp.bfloat16)
    w1p = w1p.at[:, :HID].set(w1.astype(jnp.bfloat16))
    b1p = jnp.zeros((1, HID_PAD), jnp.float32).at[:, :HID].set(b1.reshape(1, HID))
    w2p = jnp.zeros((1, HID_PAD), jnp.float32).at[:, :HID].set(w2.reshape(1, HID))
    b2p = b2.reshape(1, OUT_DIM).astype(jnp.float32)

    # Batch tiling: tile of up to TB_MAX rows, zero-pad B up to a tile multiple.
    TB = min(TB_MAX, _round_up(B, 16))
    B_pad = _round_up(B, TB)
    xb = x2.astype(jnp.bfloat16)
    if B_pad != B:
        xb = jnp.pad(xb, ((0, B_pad - B), (0, 0)))

    grid = (B_pad // TB,)

    cost = pl.CostEstimate(
        flops=2 * B_pad * IN_DIM * HID_PAD + 3 * B_pad * HID_PAD,
        transcendentals=2 * B_pad,
        bytes_accessed=(xb.size * 2 + w1p.size * 2 + b1p.size * 4
                        + w2p.size * 4 + b2p.size * 4 + B_pad * OUT_DIM * 4),
    )

    out = pl.pallas_call(
        net_d_kernel,
        out_shape=jax.ShapeDtypeStruct((B_pad, OUT_DIM), jnp.float32),
        grid=grid,
        in_specs=[
            pl.BlockSpec((TB, IN_DIM), lambda i: (i, 0)),        # x tile moves
            pl.BlockSpec((IN_DIM, HID_PAD), lambda i: (0, 0)),   # W1 resident
            pl.BlockSpec((1, HID_PAD), lambda i: (0, 0)),        # b1 resident
            pl.BlockSpec((1, HID_PAD), lambda i: (0, 0)),        # W2 row resident
            pl.BlockSpec((1, OUT_DIM), lambda i: (0, 0)),        # b2 resident
        ],
        out_specs=pl.BlockSpec((TB, OUT_DIM), lambda i: (i, 0)),
        compiler_params=pltpu.CompilerParams(
            dimension_semantics=("parallel",)),
        cost_estimate=cost,
    )(xb, w1p, b1p, w2p, b2p)

    return out[:B]


def init_params(key):
    """Torch-default Linear init: U(-1/sqrt(fan_in), 1/sqrt(fan_in)).
    Weights stored as [in, out]."""
    k1, k2, k3, k4 = jax.random.split(key, 4)
    lim1 = 1.0 / jnp.sqrt(jnp.float32(IN_DIM))
    lim2 = 1.0 / jnp.sqrt(jnp.float32(HID))
    w1 = jax.random.uniform(k1, (IN_DIM, HID), jnp.float32, -lim1, lim1)
    b1 = jax.random.uniform(k2, (HID,), jnp.float32, -lim1, lim1)
    w2 = jax.random.uniform(k3, (HID, OUT_DIM), jnp.float32, -lim2, lim2)
    b2 = jax.random.uniform(k4, (OUT_DIM,), jnp.float32, -lim2, lim2)
    return w1, b1, w2, b2


def _reference(x, w1, b1, w2, b2):
    """Plain-JAX reference with the same bf16-cast matmul inputs."""
    x2 = x.reshape(-1, IN_DIM)
    xb = x2.astype(jnp.bfloat16).astype(jnp.float32)
    w1b = w1.astype(jnp.bfloat16).astype(jnp.float32)
    h = xb @ w1b + b1.reshape(1, HID)
    h = jnp.where(h > 0, h, NEG_SLOPE * h)
    return jax.nn.sigmoid(h @ w2 + b2.reshape(1, OUT_DIM))


if __name__ == "__main__":
    key = jax.random.PRNGKey(0)
    k_x, k_x2, k_p = jax.random.split(key, 3)
    w1, b1, w2, b2 = init_params(k_p)

    # Small case (single tile, padded 8 -> 16 rows internally).
    B = 8
    x = jax.random.normal(k_x, (B, 1, 28, 28), jnp.float32)
    out = jax.block_until_ready(net_d_forward(x, w1, b1, w2, b2))
    ref = _reference(x, w1, b1, w2, b2)
    assert out.shape == (B, OUT_DIM)
    assert jnp.allclose(out, ref, atol=1e-2, rtol=1e-2)

    # Ragged, multi-tile case (TB=512, B padded to 1024, grid=(2,)).
    B2 = 700
    xl = jax.random.normal(k_x2, (B2, 1, 28, 28), jnp.float32)
    out2 = jax.block_until_ready(net_d_forward(xl, w1, b1, w2, b2))
    ref2 = _reference(xl, w1, b1, w2, b2)
    assert out2.shape == (B2, OUT_DIM)
    assert jnp.allclose(out2, ref2, atol=1e-2, rtol=1e-2)

    print("KERNEL_OK")
</pallas_src>

<mosaic_0001>
module attributes {stable_mosaic.version = 11 : i64} {
  func.func @net_d_kernel(%arg0: i32, %arg1: memref<16x784xbf16, #tpu.memory_space<vmem>>, %arg2: memref<784x640xbf16, #tpu.memory_space<vmem>>, %arg3: memref<1x640xf32, #tpu.memory_space<vmem>>, %arg4: memref<1x640xf32, #tpu.memory_space<vmem>>, %arg5: memref<1x1xf32, #tpu.memory_space<vmem>>, %arg6: memref<16x1xf32, #tpu.memory_space<vmem>>) attributes {dimension_semantics = [#tpu.dimension_semantics<parallel>], iteration_bounds = array<i64: 1>, scalar_prefetch = 0 : i64, scratch_operands = 0 : i64, tpu.core_type = #tpu.core_type<tc>, window_params = [{transform_indices = @transform_0, window_bounds = array<i64: 16, 784>}, {pipeline_mode = #tpu.pipeline_mode<synchronous>, transform_indices = @transform_1, window_bounds = array<i64: 784, 640>}, {pipeline_mode = #tpu.pipeline_mode<synchronous>, transform_indices = @transform_2, window_bounds = array<i64: 1, 640>}, {pipeline_mode = #tpu.pipeline_mode<synchronous>, transform_indices = @transform_3, window_bounds = array<i64: 1, 640>}, {pipeline_mode = #tpu.pipeline_mode<synchronous>, transform_indices = @transform_4, window_bounds = array<i64: 1, 1>}, {transform_indices = @transform_5, window_bounds = array<i64: 16, 1>}]} {
    %c0 = arith.constant 0 : index
    %c0_0 = arith.constant 0 : index
    %0 = vector.load %arg1[%c0, %c0_0] : memref<16x784xbf16, #tpu.memory_space<vmem>>, vector<16x784xbf16>
    %c0_1 = arith.constant 0 : index
    %c0_2 = arith.constant 0 : index
    %1 = vector.load %arg2[%c0_1, %c0_2] : memref<784x640xbf16, #tpu.memory_space<vmem>>, vector<784x640xbf16>
    %cst = arith.constant dense<0.000000e+00> : vector<16x640xf32>
    %2 = tpu.matmul %0, %1, %cst {dimension_numbers = #tpu.dot_dimension_numbers<[1], [0], [0], [1], [0, 0, 1, 1], [], []>} : vector<16x784xbf16>, vector<784x640xbf16>, vector<16x640xf32> -> vector<16x640xf32>
    %c0_3 = arith.constant 0 : index
    %c0_4 = arith.constant 0 : index
    %3 = vector.load %arg3[%c0_3, %c0_4] : memref<1x640xf32, #tpu.memory_space<vmem>>, vector<1x640xf32>
    %4 = vector.broadcast %3 : vector<1x640xf32> to vector<16x640xf32>
    %5 = arith.addf %2, %4 : vector<16x640xf32>
    %cst_5 = arith.constant 0.000000e+00 : f32
    %6 = vector.broadcast %cst_5 : f32 to vector<16x640xf32>
    %7 = arith.cmpf ogt, %5, %6 : vector<16x640xf32>
    %cst_6 = arith.constant 0.00999999977 : f32
    %8 = vector.broadcast %cst_6 : f32 to vector<16x640xf32>
    %9 = arith.mulf %8, %5 : vector<16x640xf32>
    %10 = arith.select %7, %5, %9 : vector<16x640xi1>, vector<16x640xf32>
    %c0_7 = arith.constant 0 : index
    %c0_8 = arith.constant 0 : index
    %11 = vector.load %arg4[%c0_7, %c0_8] : memref<1x640xf32, #tpu.memory_space<vmem>>, vector<1x640xf32>
    %12 = vector.broadcast %11 : vector<1x640xf32> to vector<16x640xf32>
    %13 = arith.mulf %10, %12 : vector<16x640xf32>
    %cst_9 = arith.constant dense<0.000000e+00> : vector<16xf32>
    %14 = vector.multi_reduction <add>, %13, %cst_9 [1] : vector<16x640xf32> to vector<16xf32>
    %15 = vector.shape_cast %14 : vector<16xf32> to vector<16x1xf32>
    %c0_10 = arith.constant 0 : index
    %c0_11 = arith.constant 0 : index
    %16 = vector.load %arg5[%c0_10, %c0_11] : memref<1x1xf32, #tpu.memory_space<vmem>>, vector<1x1xf32>
    %17 = vector.broadcast %16 : vector<1x1xf32> to vector<16x1xf32>
    %18 = arith.addf %15, %17 : vector<16x1xf32>
    %cst_12 = arith.constant 0.000000e+00 : f32
    %19 = vector.broadcast %cst_12 : f32 to vector<16x1xf32>
    %20 = arith.subf %19, %18 : vector<16x1xf32>
    %21 = math.exp %20 : vector<16x1xf32>
    %cst_13 = arith.constant 1.000000e+00 : f32
    %22 = vector.broadcast %cst_13 : f32 to vector<16x1xf32>
    %23 = arith.addf %22, %21 : vector<16x1xf32>
    %24 = tpu.reciprocal %23 {approx = true} : vector<16x1xf32> -> vector<16x1xf32>
    %c0_14 = arith.constant 0 : index
    %c0_15 = arith.constant 0 : index
    %25 = vector.load %arg6[%c0_14, %c0_15] : memref<16x1xf32, #tpu.memory_space<vmem>>, vector<16x1xf32>
    tpu.vector_store %arg6[%c0_14, %c0_15], %24 {strides = array<i32>} : memref<16x1xf32, #tpu.memory_space<vmem>>, vector<16x1xf32>,
    return
  }
  func.func @transform_0(%arg0: i32) -> (i32, i32) {
    %c0_i32 = arith.constant 0 : i32
    %c0_i32_0 = arith.constant 0 : i32
    return %arg0, %c0_i32 : i32, i32
  }
  func.func @transform_1(%arg0: i32) -> (i32, i32) {
    %c0_i32 = arith.constant 0 : i32
    %c0_i32_0 = arith.constant 0 : i32
    %c0_i32_1 = arith.constant 0 : i32
    return %c0_i32, %c0_i32_0 : i32, i32
  }
  func.func @transform_2(%arg0: i32) -> (i32, i32) {
    %c0_i32 = arith.constant 0 : i32
    %c0_i32_0 = arith.constant 0 : i32
    %c0_i32_1 = arith.constant 0 : i32
    return %c0_i32, %c0_i32_0 : i32, i32
  }
  func.func @transform_3(%arg0: i32) -> (i32, i32) {
    %c0_i32 = arith.constant 0 : i32
    %c0_i32_0 = arith.constant 0 : i32
    %c0_i32_1 = arith.constant 0 : i32
    return %c0_i32, %c0_i32_0 : i32, i32
  }
  func.func @transform_4(%arg0: i32) -> (i32, i32) {
    %c0_i32 = arith.constant 0 : i32
    %c0_i32_0 = arith.constant 0 : i32
    %c0_i32_1 = arith.constant 0 : i32
    return %c0_i32, %c0_i32_0 : i32, i32
  }
  func.func @transform_5(%arg0: i32) -> (i32, i32) {
    %c0_i32 = arith.constant 0 : i32
    %c0_i32_0 = arith.constant 0 : i32
    return %arg0, %c0_i32 : i32, i32
  }
}

</mosaic_0001>

<bundles_post_ra>
// kernel: tpu_custom_call.1
= control target key start
LH: loop header
LB: loop body
LE: loop exit
PB: predicated region body
PF: predicated region fallthrough
CT: control target
= control target key end

     0   :  { %s3242_s0 = inlined_call_operand.hbm [shape: bf16[16,784], index: 0, kind: input, shape index: {}]   ;;  %s3243_s1 = inlined_call_operand.hbm [shape: bf16[784,640], index: 1, kind: input, shape index: {}]   ;;  %s3244_s2 = inlined_call_operand.vmem [shape: f32[1,640], index: 2, kind: input, shape index: {}]   ;;  %s3245_s3 = inlined_call_operand.hbm [shape: f32[1,640], index: 3, kind: input, shape index: {}]   ;;  %s3246_s4 = inlined_call_operand.<no memory space> [shape: f32[1,1], index: 4, kind: input, shape index: {}]   ;;  %s3247_s5 = inlined_call_operand.vmem [shape: f32[16,1], index: 5, kind: output, shape index: {}]  }
   0x1   :  { %v10_v0 = vstv %s3246_s4 }
   0x2   :  { %11 = vst [vmem:[#allocation2] sm:$0x1] %v10_v0 }
   0x3   :  { %12 = vsyncpa [#allocation4], 0 }
   0x4   :  { %13 = vsyncpa [#allocation6], 0  ;;  %s3089_s20 = smov [#allocation5]  }
   0x5   :  { %s31_s21 = sshll.u32 %s3089_s20, 4  ;;  %s32_s21 = int_to_ptr.vmem [resolvable:$true] %s31_s21 }
   0x6   :  { %s3033_s22 = scalar_lea.vmem %s32_s21, 31360  ;;  %p3038_p1 = scmp.lt.s32.totalorder %s32_s21, %s32_s21 }
   0x7   :  { %p3034_p0 = scmp.ne.s32.totalorder %s32_s21, %s3033_s22  ;;  %p3039_p2 = scmp.lt.s32.totalorder %s3033_s22, %s3033_s22 }
   0x9   :  { %p3040_p3 = por %p3039_p2, %p3038_p1 }
   0xb   :  { %p3041_p4 = pnand %p3040_p3, %p3034_p0 }
   0xd   :  { %3044 = shalt.err (!%p3041_p4)
}
   0xe   :  { %s3090_s23 = smov 320   ;;  %s3091_s24 = smov 20  }
   0xf   :  { %37 = dma.hbm_to_vmem [thread:$0]  %s3243_s1, 31360, %s32_s21, [#allocation6], %s3090_s23, %s3090_s23, %s3091_s24  }
  0x10   :  { %s3092_s4 = smov [#allocation3]  }
  0x11   :  { %s19_s27 = sshll.u32 %s3092_s4, 4  ;;  %s20_s27 = int_to_ptr.vmem [resolvable:$true] %s19_s27 }
  0x12   :  { %s3053_s28 = scalar_lea.vmem %s20_s27, 896  ;;  %p3058_p6 = scmp.lt.s32.totalorder %s20_s27, %s20_s27 }
  0x13   :  { %p3054_p5 = scmp.ne.s32.totalorder %s20_s27, %s3053_s28  ;;  %p3059_p7 = scmp.lt.s32.totalorder %s3053_s28, %s3053_s28 }
  0x15   :  { %p3060_p8 = por %p3059_p7, %p3058_p6 }
  0x17   :  { %p3061_p9 = pnand %p3060_p8, %p3054_p5 }
  0x19   :  { %3064 = shalt.err (!%p3061_p9)
}
  0x1a   :  { %s3093_s29 = smov 448   ;;  %s3094_s30 = smov 28  }
  0x1b   :  { %25 = dma.hbm_to_vmem [thread:$0]  %s3242_s0, 896, %s20_s27, [#allocation4], %s3093_s29, %s3093_s29, %s3094_s30  }
  0x1c   :  { %s3095_s8 = smov [#allocation7]  }
  0x1d   :  { %s46_s9 = sshll.u32 %s3095_s8, 4  ;;  %s47_s9 = int_to_ptr.vmem [resolvable:$true] %s46_s9 }
  0x1e   :  { %s3073_s1 = scalar_lea.vmem %s47_s9, 80  ;;  %s3077_s10 = scalar_lea.vmem %s47_s9, 96 }
  0x1f   :  { %p3074_p10 = scmp.ne.s32.totalorder %s47_s9, %s3073_s1  ;;  %p3078_p11 = scmp.lt.s32.totalorder %s47_s9, %s47_s9 }
  0x20   :  { %p3079_p12 = scmp.lt.s32.totalorder %s3077_s10, %s3073_s1 }
  0x22   :  { %p3080_p13 = por %p3079_p12, %p3078_p11 }
  0x24   :  { %p3081_p0 = pnand %p3080_p13, %p3074_p10 }
  0x26   :  { %3084 = shalt.err (!%p3081_p0)
}
  0x27   :  { %49 = dma.hbm_to_vmem [thread:$0]  %s3245_s3, 80, %s47_s9, [#allocation6]  }
  0x28   :  { %3085 = dma.done.wait [#allocation4], 896  }
  0x29   :  { %3086 = vsyncadd [#allocation4], 4294966400 }
  0x2a   :  { %3087 = dma.done.wait [#allocation6], 31440  }
  0x2b   :  { %3088 = vsyncadd [#allocation6], 4294935856  ;;  %v2659_v1 = vld [vmem:[#allocation5 + $0x11c] ss:$20 sps:$4 sm:$0xff]   ;;  %v2663_v3 = vld [vmem:[#allocation5 + $0x118] ss:$20 sps:$4 sm:$0xff]  }
  0x2c   :  { %v2661_v2 = vld [vmem:[#allocation5 + $0x39c] ss:$20 sps:$4 sm:$0xff]   ;;  %1704 = vmatprep.subr.bf16.mxu0 %v2659_v1  ;;  %v2664_v4 = vld [vmem:[#allocation5 + $0x398] ss:$20 sps:$4 sm:$0xff]   ;;  %v2665_v5 = vld [vmem:[#allocation5 + $0xf4] ss:$20 sps:$4 sm:$0xff]  }
  0x2d   :  { %1747 = vmatprep.subr.bf16.mxu1 %v2661_v2  ;;  %1705 = vmatpush1.bf16.msra.mxu0 %v2663_v3  ;;  %v2667_v6 = vld [vmem:[#allocation5 + $0x374] ss:$20 sps:$4 sm:$0xff]   ;;  %v2669_v7 = vld [vmem:[#allocation5 + $0xf0] ss:$20 sps:$4 sm:$0xff]   ;;  %v2671_v9 = vld [vmem:[#allocation5 + $0xcc] ss:$20 sps:$4 sm:$0xff]  }
  0x2e   :  { %1748 = vmatpush1.bf16.msra.mxu1 %v2664_v4  ;;  %1706 = vmatprep.subr.bf16.mxu0 %v2665_v5  ;;  %v2670_v8 = vld [vmem:[#allocation5 + $0x370] ss:$20 sps:$4 sm:$0xff]   ;;  %v2673_v10 = vld [vmem:[#allocation5 + $0x34c] ss:$20 sps:$4 sm:$0xff]   ;;  %v2675_v11 = vld [vmem:[#allocation5 + $0xc8] ss:$20 sps:$4 sm:$0xff]  }
  0x2f   :  { %1749 = vmatprep.subr.bf16.mxu1 %v2667_v6  ;;  %v2676_v12 = vld [vmem:[#allocation5 + $0x348] ss:$20 sps:$4 sm:$0xff]   ;;  %v2677_v13 = vld [vmem:[#allocation5 + $0xa4] ss:$20 sps:$4 sm:$0xff]   ;;  %v2681_v15 = vld [vmem:[#allocation5 + $0xa0] ss:$20 sps:$4 sm:$0xff]  }
  0x30   :  { %v2679_v14 = vld [vmem:[#allocation5 + $0x324] ss:$20 sps:$4 sm:$0xff]   ;;  %v2682_v16 = vld [vmem:[#allocation5 + $0x320] ss:$20 sps:$4 sm:$0xff]   ;;  %v2683_v17 = vld [vmem:[#allocation5 + $0x7c] ss:$20 sps:$4 sm:$0xff]  }
  0x31   :  { %1707 = vmatpush1.bf16.msra.mxu0 %v2669_v7  ;;  %v2685_v18 = vld [vmem:[#allocation5 + $0x2fc] ss:$20 sps:$4 sm:$0xff]   ;;  %v2687_v19 = vld [vmem:[#allocation5 + $0x78] ss:$20 sps:$4 sm:$0xff]   ;;  %v2689_v21 = vld [vmem:[#allocation5 + $0x54] ss:$20 sps:$4 sm:$0xff]  }
  0x32   :  { %1750 = vmatpush1.bf16.msra.mxu1 %v2670_v8  ;;  %1708 = vmatprep.subr.bf16.mxu0 %v2671_v9  ;;  %v2688_v20 = vld [vmem:[#allocation5 + $0x2f8] ss:$20 sps:$4 sm:$0xff]   ;;  %v2691_v22 = vld [vmem:[#allocation5 + $0x2d4] ss:$20 sps:$4 sm:$0xff]   ;;  %v2693_v23 = vld [vmem:[#allocation5 + $0x50] ss:$20 sps:$4 sm:$0xff]  }
  0x33   :  { %1751 = vmatprep.subr.bf16.mxu1 %v2673_v10  ;;  %v2694_v24 = vld [vmem:[#allocation5 + $0x2d0] ss:$20 sps:$4 sm:$0xff]   ;;  %v2695_v25 = vld [vmem:[#allocation5 + $0x2c] ss:$20 sps:$4 sm:$0xff]   ;;  %v2699_v27 = vld [vmem:[#allocation5 + $0x28] ss:$20 sps:$4 sm:$0xff]  }
  0x34   :  { %v2697_v26 = vld [vmem:[#allocation5 + $0x2ac] ss:$20 sps:$4 sm:$0xff]   ;;  %v2700_v28 = vld [vmem:[#allocation5 + $0x2a8] ss:$20 sps:$4 sm:$0xff]   ;;  %v2701_v29 = vld [vmem:[#allocation5 + $0x4] ss:$20 sps:$4 sm:$0xff]  }
  0x35   :  { %1709 = vmatpush1.bf16.msra.mxu0 %v2675_v11  ;;  %v2703_v30 = vld [vmem:[#allocation5 + $0x284] ss:$20 sps:$4 sm:$0xff]   ;;  %v2705_v31 = vld [vmem:[#allocation5] ss:$20 sps:$4 sm:$0xff]   ;;  %v2707_v33 = vld [vmem:[#allocation5 + $0x25c] ss:$20 sps:$4 sm:$0xff]  }
  0x36   :  { %1752 = vmatpush1.bf16.msra.mxu1 %v2676_v12  ;;  %1710 = vmatprep.subr.bf16.mxu0 %v2677_v13  ;;  %v2706_v32 = vld [vmem:[#allocation5 + $0x280] ss:$20 sps:$4 sm:$0xff]   ;;  %v2709_v34 = vld [vmem:[#allocation5 + $0x4dc] ss:$20 sps:$4 sm:$0xff]   ;;  %v2711_v35 = vld [vmem:[#allocation5 + $0x258] ss:$20 sps:$4 sm:$0xff]  }
  0x37   :  { %1753 = vmatprep.subr.bf16.mxu1 %v2679_v14  ;;  %v2712_v36 = vld [vmem:[#allocation5 + $0x4d8] ss:$20 sps:$4 sm:$0xff]   ;;  %v2713_v37 = vld [vmem:[#allocation5 + $0x234] ss:$20 sps:$4 sm:$0xff]   ;;  %v2717_v39 = vld [vmem:[#allocation5 + $0x230] ss:$20 sps:$4 sm:$0xff]  }
  0x38   :  { %v2715_v38 = vld [vmem:[#allocation5 + $0x4b4] ss:$20 sps:$4 sm:$0xff]   ;;  %v2718_v40 = vld [vmem:[#allocation5 + $0x4b0] ss:$20 sps:$4 sm:$0xff]   ;;  %v2719_v41 = vld [vmem:[#allocation5 + $0x20c] ss:$20 sps:$4 sm:$0xff]  }
  0x39   :  { %1711 = vmatpush1.bf16.msra.mxu0 %v2681_v15  ;;  %v2721_v42 = vld [vmem:[#allocation5 + $0x48c] ss:$20 sps:$4 sm:$0xff]   ;;  %v2723_v43 = vld [vmem:[#allocation5 + $0x208] ss:$20 sps:$4 sm:$0xff]   ;;  %v2725_v45 = vld [vmem:[#allocation5 + $0x1e4] ss:$20 sps:$4 sm:$0xff]  }
  0x3a   :  { %1754 = vmatpush1.bf16.msra.mxu1 %v2682_v16  ;;  %1712 = vmatprep.subr.bf16.mxu0 %v2683_v17  ;;  %v2724_v44 = vld [vmem:[#allocation5 + $0x488] ss:$20 sps:$4 sm:$0xff]   ;;  %v2727_v46 = vld [vmem:[#allocation5 + $0x464] ss:$20 sps:$4 sm:$0xff]   ;;  %v2729_v47 = vld [vmem:[#allocation5 + $0x1e0] ss:$20 sps:$4 sm:$0xff]  }
  0x3b   :  { %1755 = vmatprep.subr.bf16.mxu1 %v2685_v18  ;;  %v2730_v48 = vld [vmem:[#allocation5 + $0x460] ss:$20 sps:$4 sm:$0xff]   ;;  %v3141_v49 = vld [vmem:[#allocation3 + $0x4] ss:$28 sps:$4 sm:$0xff]   ;;  %v2731_v50 = vld [vmem:[#allocation5 + $0x1bc] ss:$20 sps:$4 sm:$0xff]  }
  0x3c   :  { %v3143_v51 = vld [vmem:[#allocation3 + $0xc] ss:$28 sps:$4 sm:$0xff]   ;;  %1736 = vmatprep.mubr.bf16.mxu0 %v3141_v49  ;;  %v2735_v53 = vld [vmem:[#allocation5 + $0x1b8] ss:$20 sps:$4 sm:$0xff]   ;;  %v2747_v61 = vld [vmem:[#allocation5 + $0x168] ss:$20 sps:$4 sm:$0xff]  }
  0x3d   :  { %1713 = vmatpush1.bf16.msra.mxu0 %v2687_v19  ;;  %v2733_v52 = vld [vmem:[#allocation5 + $0x43c] ss:$20 sps:$4 sm:$0xff]   ;;  %1779 = vmatprep.mubr.bf16.mxu1 %v3143_v51  ;;  %v2736_v54 = vld [vmem:[#allocation5 + $0x438] ss:$20 sps:$4 sm:$0xff]   ;;  %v2737_v55 = vld [vmem:[#allocation5 + $0x194] ss:$20 sps:$4 sm:$0xff]  }
  0x3e   :  { %1756 = vmatpush1.bf16.msra.mxu1 %v2688_v20  ;;  %1714 = vmatprep.subr.bf16.mxu0 %v2689_v21  ;;  %v2739_v56 = vld [vmem:[#allocation5 + $0x414] ss:$20 sps:$4 sm:$0xff]   ;;  %v2741_v57 = vld [vmem:[#allocation5 + $0x190] ss:$20 sps:$4 sm:$0xff]   ;;  %v2743_v59 = vld [vmem:[#allocation5 + $0x16c] ss:$20 sps:$4 sm:$0xff]  }
  0x3f   :  { %1757 = vmatprep.subr.bf16.mxu1 %v2691_v22  ;;  %v2742_v58 = vld [vmem:[#allocation5 + $0x410] ss:$20 sps:$4 sm:$0xff]   ;;  %v2745_v60 = vld [vmem:[#allocation5 + $0x3ec] ss:$20 sps:$4 sm:$0xff]   ;;  %v2748_v62 = vld [vmem:[#allocation5 + $0x3e8] ss:$20 sps:$4 sm:$0xff]  }
  0x40   :  { %v2749_v63 = vld [vmem:[#allocation5 + $0x144] ss:$20 sps:$4 sm:$0xff]   ;;  %v2753_v1 = vld [vmem:[#allocation5 + $0x140] ss:$20 sps:$4 sm:$0xff]   ;;  %v2763_v3 = vld [vmem:[#allocation5 + $0x61c] ss:$20 sps:$4 sm:$0xff]  }
  0x41   :  { %1715 = vmatpush1.bf16.msra.mxu0 %v2693_v23  ;;  %v2751_v0 = vld [vmem:[#allocation5 + $0x3c4] ss:$20 sps:$4 sm:$0xff]   ;;  %v2754_v2 = vld [vmem:[#allocation5 + $0x3c0] ss:$20 sps:$4 sm:$0xff]   ;;  %v3149_v6 = vld [vmem:[#allocation3 + $0x8] ss:$28 sps:$4 sm:$0xff]  }
  0x42   :  { %1758 = vmatpush1.bf16.msra.mxu1 %v2694_v24  ;;  %1716 = vmatprep.subr.bf16.mxu0 %v2695_v25  ;;  %v2766_v4 = vld [vmem:[#allocation5 + $0x784] ss:$20 sps:$4 sm:$0xff]   ;;  %v2764_v8 = vld [vmem:[#allocation5 + $0x780] ss:$20 sps:$4 sm:$0xff]   ;;  %v3096_v12 = vmov 0   ;;  %vm1700_vm0 = vcmask 130048  }
  0x43   :  { %1759 = vmatprep.subr.bf16.mxu1 %v2697_v26  ;;  %v3147_v5 = vld [vmem:[#allocation3] ss:$28 sps:$4 sm:$0xff]   ;;  %v2761_v7 = vld [vmem:[#allocation5 + $0x618] ss:$20 sps:$4 sm:$0xff]   ;;  %v2770_v14 = vld [vmem:[#allocation5 + $0x120] ss:$20 sps:$4 sm:$0xff]  }
  0x44   :  { %v2769_v9 = vld [vmem:[#allocation5 + $0x5f4] ss:$20 sps:$4 sm:$0xff]   ;;  %v2772_v10 = vld [vmem:[#allocation5 + $0x124] ss:$20 sps:$4 sm:$0xff]   ;;  %v2775_v13 = vld [vmem:[#allocation5 + $0x5cc] ss:$20 sps:$4 sm:$0xff]  }
  0x45   :  { %1717 = vmatpush1.bf16.msra.mxu0 %v2699_v27  ;;  %v2767_v11 = vld [vmem:[#allocation5 + $0x5f0] ss:$20 sps:$4 sm:$0xff]   ;;  %v3154_v15 = vld [vmem:[#allocation3 + $0x18] ss:$28 sps:$4 sm:$0xff]   ;;  %v2777_v19 = vld [vmem:[#allocation5 + $0xf8] ss:$20 sps:$4 sm:$0xff]  }
  0x46   :  { %1760 = vmatpush1.bf16.msra.mxu1 %v2700_v28  ;;  %1718 = vmatprep.subr.bf16.mxu0 %v2701_v29  ;;  %v2773_v16 = vld [vmem:[#allocation5 + $0x5c8] ss:$20 sps:$4 sm:$0xff]   ;;  %v2782_v18 = vld [vmem:[#allocation5 + $0x5a4] ss:$20 sps:$4 sm:$0xff]   ;;  %v2780_v20 = vld [vmem:[#allocation5 + $0x5a0] ss:$20 sps:$4 sm:$0xff]  }
  0x47   :  { %1761 = vmatprep.subr.bf16.mxu1 %v2703_v30  ;;  %v2779_v17 = vld [vmem:[#allocation5 + $0xfc] ss:$20 sps:$4 sm:$0xff]   ;;  %v2785_v21 = vld [vmem:[#allocation5 + $0xd4] ss:$20 sps:$4 sm:$0xff]   ;;  %v2786_v24 = vld [vmem:[#allocation5 + $0x578] ss:$20 sps:$4 sm:$0xff]  }
  0x48   :  { %v2788_v22 = vld [vmem:[#allocation5 + $0x57c] ss:$20 sps:$4 sm:$0xff]   ;;  %v2791_v25 = vld [vmem:[#allocation5 + $0xac] ss:$20 sps:$4 sm:$0xff]   ;;  %v2794_v26 = vld [vmem:[#allocation5 + $0x554] ss:$20 sps:$4 sm:$0xff]  }
  0x49   :  { %1719 = vmatpush1.bf16.msra.mxu0 %v2705_v31  ;;  %v2783_v23 = vld [vmem:[#allocation5 + $0xd0] ss:$20 sps:$4 sm:$0xff]   ;;  %v2789_v27 = vld [vmem:[#allocation5 + $0xa8] ss:$20 sps:$4 sm:$0xff]   ;;  %v2800_v30 = vld [vmem:[#allocation5 + $0x52c] ss:$20 sps:$4 sm:$0xff]  }
  0x4a   :  { %1762 = vmatpush1.bf16.msra.mxu1 %v2706_v32  ;;  %1720 = vmatprep.subr.bf16.mxu0 %v2707_v33  ;;  %v2792_v28 = vld [vmem:[#allocation5 + $0x550] ss:$20 sps:$4 sm:$0xff]   ;;  %v2795_v31 = vld [vmem:[#allocation5 + $0x80] ss:$20 sps:$4 sm:$0xff]   ;;  %v2798_v32 = vld [vmem:[#allocation5 + $0x528] ss:$20 sps:$4 sm:$0xff]  }
  0x4b   :  { %1763 = vmatprep.subr.bf16.mxu1 %v2709_v34  ;;  %v2797_v29 = vld [vmem:[#allocation5 + $0x84] ss:$20 sps:$4 sm:$0xff]   ;;  %v2803_v33 = vld [vmem:[#allocation5 + $0x5c] ss:$20 sps:$4 sm:$0xff]   ;;  %vm3098_vm1 = vmmov 0   ;;  %vm2310_vm12 = vcmask 7168  }
  0x4c   :  { %v3159_v34 = vld [vmem:[#allocation3 + $0x14] ss:$28 sps:$4 sm:$0xff]  }
  0x4d   :  { %1721 = vmatpush2.bf16.msra.mxu0 %v2711_v35  ;;  %v2806_v35 = vld [vmem:[#allocation5 + $0x504] ss:$20 sps:$4 sm:$0xff]  }
  0x4e   :  { %1764 = vmatpush2.bf16.msra.mxu1 %v2712_v36  ;;  %1722 = vmatprep.subr.bf16.mxu0 %v2713_v37  ;;  %v2801_v36 = vld [vmem:[#allocation5 + $0x58] ss:$20 sps:$4 sm:$0xff]   ;;  %v2804_v37 = vld [vmem:[#allocation5 + $0x500] ss:$20 sps:$4 sm:$0xff]  }
  0x4f   :  { %1765 = vmatprep.subr.bf16.mxu1 %v2715_v38  ;;  %v2809_v38 = vld [vmem:[#allocation5 + $0x34] ss:$20 sps:$4 sm:$0xff]  }
  0x51   :  { %1723 = vmatpush2.bf16.msra.mxu0 %v2717_v39  ;;  %v2812_v39 = vld [vmem:[#allocation5 + $0x75c] ss:$20 sps:$4 sm:$0xff]  }
  0x52   :  { %1766 = vmatpush2.bf16.msra.mxu1 %v2718_v40  ;;  %1724 = vmatprep.subr.bf16.mxu0 %v2719_v41  ;;  %v2807_v40 = vld [vmem:[#allocation5 + $0x30] ss:$20 sps:$4 sm:$0xff]   ;;  %v2810_v41 = vld [vmem:[#allocation5 + $0x758] ss:$20 sps:$4 sm:$0xff]  }
  0x53   :  { %1767 = vmatprep.subr.bf16.mxu1 %v2721_v42  ;;  %v2815_v42 = vld [vmem:[#allocation5 + $0xc] ss:$20 sps:$4 sm:$0xff]  }
  0x55   :  { %1725 = vmatpush2.bf16.msra.mxu0 %v2723_v43  ;;  %v2818_v43 = vld [vmem:[#allocation5 + $0x734] ss:$20 sps:$4 sm:$0xff]  }
  0x56   :  { %1768 = vmatpush2.bf16.msra.mxu1 %v2724_v44  ;;  %1726 = vmatprep.subr.bf16.mxu0 %v2725_v45  ;;  %v2813_v44 = vld [vmem:[#allocation5 + $0x8] ss:$20 sps:$4 sm:$0xff]   ;;  %v2816_v45 = vld [vmem:[#allocation5 + $0x730] ss:$20 sps:$4 sm:$0xff]  }
  0x57   :  { %1769 = vmatprep.subr.bf16.mxu1 %v2727_v46  ;;  %v2821_v46 = vld [vmem:[#allocation5 + $0x264] ss:$20 sps:$4 sm:$0xff]  }
  0x59   :  { %1727 = vmatpush2.bf16.msra.mxu0 %v2729_v47  ;;  %v2824_v47 = vld [vmem:[#allocation5 + $0x70c] ss:$20 sps:$4 sm:$0xff]  }
  0x5a   :  { %1770 = vmatpush2.bf16.msra.mxu1 %v2730_v48  ;;  %1728 = vmatprep.subr.bf16.mxu0 %v2731_v50  ;;  %v2819_v48 = vld [vmem:[#allocation5 + $0x260] ss:$20 sps:$4 sm:$0xff]   ;;  %v2827_v50 = vld [vmem:[#allocation5 + $0x23c] ss:$20 sps:$4 sm:$0xff]  }
  0x5b   :  { %1771 = vmatprep.subr.bf16.mxu1 %v2733_v52  ;;  %v2830_v52 = vld [vmem:[#allocation5 + $0x6e4] ss:$20 sps:$4 sm:$0xff]  }
  0x5d   :  { %1729 = vmatpush2.bf16.msra.mxu0 %v2735_v53  ;;  %v2825_v53 = vld [vmem:[#allocation5 + $0x238] ss:$20 sps:$4 sm:$0xff]  }
  0x5e   :  { %1772 = vmatpush2.bf16.msra.mxu1 %v2736_v54  ;;  %1730 = vmatprep.subr.bf16.mxu0 %v2737_v55  ;;  %v2828_v54 = vld [vmem:[#allocation5 + $0x6e0] ss:$20 sps:$4 sm:$0xff]  }
  0x5f   :  { %1773 = vmatprep.subr.bf16.mxu1 %v2739_v56  ;;  %v2833_v55 = vld [vmem:[#allocation5 + $0x214] ss:$20 sps:$4 sm:$0xff]   ;;  %v2836_v56 = vld [vmem:[#allocation5 + $0x6bc] ss:$20 sps:$4 sm:$0xff]  }
  0x61   :  { %1731 = vmatpush2.bf16.msra.mxu0 %v2741_v57  ;;  %v2831_v57 = vld [vmem:[#allocation5 + $0x210] ss:$20 sps:$4 sm:$0xff]  }
  0x62   :  { %1774 = vmatpush2.bf16.msra.mxu1 %v2742_v58  ;;  %1732 = vmatprep.subr.bf16.mxu0 %v2743_v59  ;;  %v2834_v58 = vld [vmem:[#allocation5 + $0x6b8] ss:$20 sps:$4 sm:$0xff]  }
  0x63   :  { %1775 = vmatprep.subr.bf16.mxu1 %v2745_v60  ;;  %v2839_v59 = vld [vmem:[#allocation5 + $0x1ec] ss:$20 sps:$4 sm:$0xff]   ;;  %v2842_v60 = vld [vmem:[#allocation5 + $0x694] ss:$20 sps:$4 sm:$0xff]  }
  0x65   :  { %1733 = vmatpush2.bf16.msra.mxu0 %v2747_v61  ;;  %v2837_v61 = vld [vmem:[#allocation5 + $0x1e8] ss:$20 sps:$4 sm:$0xff]  }
  0x66   :  { %1776 = vmatpush2.bf16.msra.mxu1 %v2748_v62  ;;  %1734 = vmatprep.subr.bf16.mxu0 %v2749_v63  ;;  %v2840_v62 = vld [vmem:[#allocation5 + $0x690] ss:$20 sps:$4 sm:$0xff]  }
  0x67   :  { %1777 = vmatprep.subr.bf16.mxu1 %v2751_v0  ;;  %v2845_v63 = vld [vmem:[#allocation5 + $0x1c4] ss:$20 sps:$4 sm:$0xff]   ;;  %v2848_v0 = vld [vmem:[#allocation5 + $0x66c] ss:$20 sps:$4 sm:$0xff]  }
  0x69   :  { %1735 = vmatpush2.bf16.msra.mxu0 %v2753_v1  ;;  %v2843_v1 = vld [vmem:[#allocation5 + $0x1c0] ss:$20 sps:$4 sm:$0xff]  }
  0x6a   :  { %1778 = vmatpush2.bf16.msra.mxu1 %v2754_v2  ;;  %1790 = vmatprep.subr.bf16.mxu0 %v2763_v3  ;;  %v2846_v2 = vld [vmem:[#allocation5 + $0x668] ss:$20 sps:$4 sm:$0xff]  }
  0x6b   :  { %1847 = vmatprep.subr.bf16.mxu1 %v2766_v4  ;;  %v2851_v3 = vld [vmem:[#allocation5 + $0x19c] ss:$20 sps:$4 sm:$0xff]   ;;  %v2854_v4 = vld [vmem:[#allocation5 + $0x644] ss:$20 sps:$4 sm:$0xff]  }
  0x6c   :  { %1737 = vmatmul.mubr.bf16.vlgmr.msra.gmra.mxu0 %v3147_v5 }
  0x6d   :  { %1780 = vmatmul.mubr.bf16.vlgmr.msra.gmra.mxu1 %v3149_v6  ;;  %1791 = vmatpush1.bf16.msra.mxu0 %v2761_v7  ;;  %v2849_v7 = vld [vmem:[#allocation5 + $0x198] ss:$20 sps:$4 sm:$0xff]  }
  0x6e   :  { %1848 = vmatpush1.bf16.msra.mxu1 %v2764_v8  ;;  %1792 = vmatprep.subr.bf16.mxu0 %v2769_v9  ;;  %v2852_v8 = vld [vmem:[#allocation5 + $0x640] ss:$20 sps:$4 sm:$0xff]  }
  0x6f   :  { %1865 = vmatprep.mubr.bf16.mxu1 %v3096_v12  ;;  %1876 = vmatprep.subr.bf16.mxu1 %v2772_v10  ;;  %v2860_v9 = vld [vmem:[#allocation5 + $0x174] ss:$20 sps:$4 sm:$0xff]   ;;  %v2863_v10 = vld [vmem:[#allocation5 + $0x3a4] ss:$20 sps:$4 sm:$0xff]  }
  0x70   :  { %1822 = vmatprep.mubr.bf16.mxu0 %v3159_v34 }
  0x71   :  { %1793 = vmatpush1.bf16.msra.mxu0 %v2767_v11  ;;  %v3162_v11 = vld [vmem:[#allocation3 + $0x10] ss:$28 sps:$4 sm:$0xff]  }
  0x72   :  { %1794 = vmatprep.subr.bf16.mxu0 %v2775_v13  ;;  %v2858_v13 = vld [vmem:[#allocation5 + $0x170] ss:$20 sps:$4 sm:$0xff]  }
  0x75   :  { %2571 = vmatmul.mubr.msk.bf16.vlgmr.msra.gmra.mxu1 %vm1700_vm0, %v3154_v15  ;;  %1795 = vmatpush1.bf16.msra.mxu0 %v2773_v16  ;;  %v2866_v16 = vld [vmem:[#allocation5 + $0x14c] ss:$20 sps:$4 sm:$0xff]  }
  0x76   :  { %1877 = vmatpush1.bf16.msra.mxu1 %v2770_v14  ;;  %1796 = vmatprep.subr.bf16.mxu0 %v2782_v18  ;;  %v2861_v14 = vld [vmem:[#allocation5 + $0x3a0] ss:$20 sps:$4 sm:$0xff]   ;;  %v2864_v18 = vld [vmem:[#allocation5 + $0x148] ss:$20 sps:$4 sm:$0xff]  }
  0x77   :  { %1878 = vmatprep.subr.bf16.mxu1 %v2779_v17  ;;  %1908 = vmatprep.mubr.bf16.mxu1 %v3141_v49  ;;  %v2822_v49 = vld [vmem:[#allocation5 + $0x708] ss:$20 sps:$4 sm:$0xff]  }
  0x78   :  { %v2869_v17 = vld [vmem:[#allocation5 + $0x37c] ss:$20 sps:$4 sm:$0xff]  }
  0x79   :  { %1797 = vmatpush1.bf16.msra.mxu0 %v2780_v20  ;;  %v2872_v20 = vld [vmem:[#allocation5 + $0x624] ss:$20 sps:$4 sm:$0xff]  }
  0x7a   :  { %1879 = vmatpush1.bf16.msra.mxu1 %v2777_v19  ;;  %1798 = vmatprep.subr.bf16.mxu0 %v2788_v22  ;;  %v2867_v19 = vld [vmem:[#allocation5 + $0x378] ss:$20 sps:$4 sm:$0xff]   ;;  %v2870_v22 = vld [vmem:[#allocation5 + $0x620] ss:$20 sps:$4 sm:$0xff]  }
  0x7b   :  { %1880 = vmatprep.subr.bf16.mxu1 %v2785_v21  ;;  %v2875_v21 = vld [vmem:[#allocation5 + $0x354] ss:$20 sps:$4 sm:$0xff]  }
  0x7d   :  { %1799 = vmatpush1.bf16.msra.mxu0 %v2786_v24  ;;  %v2878_v24 = vld [vmem:[#allocation5 + $0x5fc] ss:$20 sps:$4 sm:$0xff]  }
  0x7e   :  { %1881 = vmatpush1.bf16.msra.mxu1 %v2783_v23  ;;  %1800 = vmatprep.subr.bf16.mxu0 %v2794_v26  ;;  %v2873_v23 = vld [vmem:[#allocation5 + $0x350] ss:$20 sps:$4 sm:$0xff]   ;;  %v2876_v26 = vld [vmem:[#allocation5 + $0x5f8] ss:$20 sps:$4 sm:$0xff]  }
  0x7f   :  { %1882 = vmatprep.subr.bf16.mxu1 %v2791_v25  ;;  %v2881_v25 = vld [vmem:[#allocation5 + $0x32c] ss:$20 sps:$4 sm:$0xff]  }
  0x81   :  { %1801 = vmatpush1.bf16.msra.mxu0 %v2792_v28  ;;  %v2884_v28 = vld [vmem:[#allocation5 + $0x5d4] ss:$20 sps:$4 sm:$0xff]  }
  0x82   :  { %1883 = vmatpush1.bf16.msra.mxu1 %v2789_v27  ;;  %1802 = vmatprep.subr.bf16.mxu0 %v2800_v30  ;;  %v2879_v27 = vld [vmem:[#allocation5 + $0x328] ss:$20 sps:$4 sm:$0xff]   ;;  %v2882_v30 = vld [vmem:[#allocation5 + $0x5d0] ss:$20 sps:$4 sm:$0xff]  }
  0x83   :  { %1884 = vmatprep.subr.bf16.mxu1 %v2797_v29  ;;  %v2887_v29 = vld [vmem:[#allocation5 + $0x304] ss:$20 sps:$4 sm:$0xff]  }
  0x85   :  { %1803 = vmatpush1.bf16.msra.mxu0 %v2798_v32  ;;  %v2893_v32 = vld [vmem:[#allocation5 + $0x2dc] ss:$20 sps:$4 sm:$0xff]  }
  0x86   :  { %1885 = vmatpush1.bf16.msra.mxu1 %v2795_v31  ;;  %1804 = vmatprep.subr.bf16.mxu0 %v2806_v35  ;;  %v2890_v31 = vld [vmem:[#allocation5 + $0x5ac] ss:$20 sps:$4 sm:$0xff]   ;;  %v2896_v35 = vld [vmem:[#allocation5 + $0x584] ss:$20 sps:$4 sm:$0xff]  }
  0x87   :  { %1886 = vmatprep.subr.bf16.mxu1 %v2803_v33  ;;  %v2888_v33 = vld [vmem:[#allocation5 + $0x5a8] ss:$20 sps:$4 sm:$0xff]  }
  0x89   :  { %1805 = vmatpush1.bf16.msra.mxu0 %v2804_v37  ;;  %v2894_v37 = vld [vmem:[#allocation5 + $0x580] ss:$20 sps:$4 sm:$0xff]  }
  0x8a   :  { %1887 = vmatpush1.bf16.msra.mxu1 %v2801_v36  ;;  %1806 = vmatprep.subr.bf16.mxu0 %v2812_v39  ;;  %v2899_v36 = vld [vmem:[#allocation5 + $0x2b4] ss:$20 sps:$4 sm:$0xff]   ;;  %v2902_v39 = vld [vmem:[#allocation5 + $0x55c] ss:$20 sps:$4 sm:$0xff]  }
  0x8b   :  { %1888 = vmatprep.subr.bf16.mxu1 %v2809_v38  ;;  %v2897_v38 = vld [vmem:[#allocation5 + $0x2b0] ss:$20 sps:$4 sm:$0xff]  }
  0x8d   :  { %1807 = vmatpush2.bf16.msra.mxu0 %v2810_v41  ;;  %v2900_v41 = vld [vmem:[#allocation5 + $0x558] ss:$20 sps:$4 sm:$0xff]  }
  0x8e   :  { %1889 = vmatpush1.bf16.msra.mxu1 %v2807_v40  ;;  %1808 = vmatprep.subr.bf16.mxu0 %v2818_v43  ;;  %v2905_v40 = vld [vmem:[#allocation5 + $0x28c] ss:$20 sps:$4 sm:$0xff]   ;;  %v2908_v43 = vld [vmem:[#allocation5 + $0x534] ss:$20 sps:$4 sm:$0xff]  }
  0x8f   :  { %1890 = vmatprep.subr.bf16.mxu1 %v2815_v42  ;;  %v2903_v42 = vld [vmem:[#allocation5 + $0x288] ss:$20 sps:$4 sm:$0xff]  }
  0x91   :  { %1809 = vmatpush2.bf16.msra.mxu0 %v2816_v45  ;;  %v2906_v45 = vld [vmem:[#allocation5 + $0x530] ss:$20 sps:$4 sm:$0xff]  }
  0x92   :  { %1891 = vmatpush1.bf16.msra.mxu1 %v2813_v44  ;;  %1810 = vmatprep.subr.bf16.mxu0 %v2824_v47  ;;  %v2911_v44 = vld [vmem:[#allocation5 + $0x4e4] ss:$20 sps:$4 sm:$0xff]   ;;  %v2914_v47 = vld [vmem:[#allocation5 + $0x50c] ss:$20 sps:$4 sm:$0xff]  }
  0x93   :  { %1892 = vmatprep.subr.bf16.mxu1 %v2821_v46  ;;  %v2909_v46 = vld [vmem:[#allocation5 + $0x4e0] ss:$20 sps:$4 sm:$0xff]  }
  0x95   :  { %1811 = vmatpush2.bf16.msra.mxu0 %v2822_v49  ;;  %v2912_v49 = vld [vmem:[#allocation5 + $0x508] ss:$20 sps:$4 sm:$0xff]  }
  0x96   :  { %1893 = vmatpush2.bf16.msra.mxu1 %v2819_v48  ;;  %1812 = vmatprep.subr.bf16.mxu0 %v2830_v52  ;;  %v2917_v48 = vld [vmem:[#allocation5 + $0x4bc] ss:$20 sps:$4 sm:$0xff]   ;;  %v2920_v52 = vld [vmem:[#allocation5 + $0x764] ss:$20 sps:$4 sm:$0xff]  }
  0x97   :  { %1894 = vmatprep.subr.bf16.mxu1 %v2827_v50  ;;  %v2915_v50 = vld [vmem:[#allocation5 + $0x4b8] ss:$20 sps:$4 sm:$0xff]  }
  0x99   :  { %1813 = vmatpush2.bf16.msra.mxu0 %v2828_v54  ;;  %v2918_v54 = vld [vmem:[#allocation5 + $0x760] ss:$20 sps:$4 sm:$0xff]  }
  0x9a   :  { %1895 = vmatpush2.bf16.msra.mxu1 %v2825_v53  ;;  %1814 = vmatprep.subr.bf16.mxu0 %v2836_v56  ;;  %v2923_v53 = vld [vmem:[#allocation5 + $0x494] ss:$20 sps:$4 sm:$0xff]   ;;  %v2926_v56 = vld [vmem:[#allocation5 + $0x73c] ss:$20 sps:$4 sm:$0xff]  }
  0x9b   :  { %1896 = vmatprep.subr.bf16.mxu1 %v2833_v55  ;;  %v2921_v55 = vld [vmem:[#allocation5 + $0x490] ss:$20 sps:$4 sm:$0xff]  }
  0x9d   :  { %1815 = vmatpush2.bf16.msra.mxu0 %v2834_v58  ;;  %v2924_v58 = vld [vmem:[#allocation5 + $0x738] ss:$20 sps:$4 sm:$0xff]  }
  0x9e   :  { %1897 = vmatpush2.bf16.msra.mxu1 %v2831_v57  ;;  %1816 = vmatprep.subr.bf16.mxu0 %v2842_v60  ;;  %v2929_v57 = vld [vmem:[#allocation5 + $0x46c] ss:$20 sps:$4 sm:$0xff]   ;;  %v2932_v60 = vld [vmem:[#allocation5 + $0x714] ss:$20 sps:$4 sm:$0xff]  }
  0x9f   :  { %1898 = vmatprep.subr.bf16.mxu1 %v2839_v59  ;;  %v2927_v59 = vld [vmem:[#allocation5 + $0x468] ss:$20 sps:$4 sm:$0xff]  }
  0xa1   :  { %1817 = vmatpush2.bf16.msra.mxu0 %v2840_v62  ;;  %v2930_v62 = vld [vmem:[#allocation5 + $0x710] ss:$20 sps:$4 sm:$0xff]  }
  0xa2   :  { %1899 = vmatpush2.bf16.msra.mxu1 %v2837_v61  ;;  %1818 = vmatprep.subr.bf16.mxu0 %v2848_v0  ;;  %v2935_v61 = vld [vmem:[#allocation5 + $0x444] ss:$20 sps:$4 sm:$0xff]   ;;  %v2938_v0 = vld [vmem:[#allocation5 + $0x6ec] ss:$20 sps:$4 sm:$0xff]  }
  0xa3   :  { %1900 = vmatprep.subr.bf16.mxu1 %v2845_v63  ;;  %v2933_v63 = vld [vmem:[#allocation5 + $0x440] ss:$20 sps:$4 sm:$0xff]  }
  0xa5   :  { %1819 = vmatpush2.bf16.msra.mxu0 %v2846_v2  ;;  %v2936_v2 = vld [vmem:[#allocation5 + $0x6e8] ss:$20 sps:$4 sm:$0xff]  }
  0xa6   :  { %1901 = vmatpush2.bf16.msra.mxu1 %v2843_v1  ;;  %1820 = vmatprep.subr.bf16.mxu0 %v2854_v4  ;;  %v2941_v1 = vld [vmem:[#allocation5 + $0x41c] ss:$20 sps:$4 sm:$0xff]   ;;  %v2944_v4 = vld [vmem:[#allocation5 + $0x6c4] ss:$20 sps:$4 sm:$0xff]  }
  0xa7   :  { %1902 = vmatprep.subr.bf16.mxu1 %v2851_v3  ;;  %v2939_v3 = vld [vmem:[#allocation5 + $0x418] ss:$20 sps:$4 sm:$0xff]  }
  0xa9   :  { %1821 = vmatpush2.bf16.msra.mxu0 %v2852_v8  ;;  %v2942_v8 = vld [vmem:[#allocation5 + $0x6c0] ss:$20 sps:$4 sm:$0xff]  }
  0xaa   :  { %1903 = vmatpush2.bf16.msra.mxu1 %v2849_v7  ;;  %1919 = vmatprep.subr.bf16.mxu0 %v2863_v10  ;;  %v2947_v7 = vld [vmem:[#allocation5 + $0x3f4] ss:$20 sps:$4 sm:$0xff]   ;;  %v2950_v10 = vld [vmem:[#allocation5 + $0x69c] ss:$20 sps:$4 sm:$0xff]  }
  0xab   :  { %1904 = vmatprep.subr.bf16.mxu1 %v2860_v9  ;;  %v2945_v9 = vld [vmem:[#allocation5 + $0x3f0] ss:$20 sps:$4 sm:$0xff]  }
  0xac   :  { %1823 = vmatmul.mubr.bf16.vlgmr.msra.gmra.mxu0 %v3162_v11 }
  0xad   :  { %1920 = vmatpush1.bf16.msra.mxu0 %v2861_v14  ;;  %1951 = vmatprep.mubr.bf16.mxu0 %v3143_v51  ;;  %v2885_v51 = vld [vmem:[#allocation5 + $0x300] ss:$20 sps:$4 sm:$0xff]   ;;  %v2948_v14 = vld [vmem:[#allocation5 + $0x698] ss:$20 sps:$4 sm:$0xff]  }
  0xae   :  { %1905 = vmatpush2.bf16.msra.mxu1 %v2858_v13  ;;  %1921 = vmatprep.subr.bf16.mxu0 %v2869_v17  ;;  %v2953_v13 = vld [vmem:[#allocation5 + $0x3cc] ss:$20 sps:$4 sm:$0xff]   ;;  %v2956_v17 = vld [vmem:[#allocation5 + $0x674] ss:$20 sps:$4 sm:$0xff]  }
  0xaf   :  { %1906 = vmatprep.subr.bf16.mxu1 %v2866_v16  ;;  %v2951_v16 = vld [vmem:[#allocation5 + $0x3c8] ss:$20 sps:$4 sm:$0xff]  }
  0xb1   :  { %1922 = vmatpush1.bf16.msra.mxu0 %v2867_v19  ;;  %v2954_v19 = vld [vmem:[#allocation5 + $0x670] ss:$20 sps:$4 sm:$0xff]  }
  0xb2   :  { %1907 = vmatpush2.bf16.msra.mxu1 %v2864_v18  ;;  %1923 = vmatprep.subr.bf16.mxu0 %v2875_v21  ;;  %v2957_v18 = vld [vmem:[#allocation5 + $0x268] ss:$20 sps:$4 sm:$0xff]   ;;  %v2961_v21 = vld [vmem:[#allocation5 + $0x64c] ss:$20 sps:$4 sm:$0xff]  }
  0xb3   :  { %1962 = vmatprep.subr.bf16.mxu1 %v2872_v20  ;;  %v2958_v20 = vld [vmem:[#allocation5 + $0x128] ss:$20 sps:$4 sm:$0xff]  }
  0xb5   :  { %1909 = vmatmul.mubr.bf16.vlgmr.msra.gmra.mxu1 %v3147_v5  ;;  %1924 = vmatpush1.bf16.msra.mxu0 %v2873_v23  ;;  %v2891_v5 = vld [vmem:[#allocation5 + $0x2d8] ss:$20 sps:$4 sm:$0xff]   ;;  %v2959_v23 = vld [vmem:[#allocation5 + $0x648] ss:$20 sps:$4 sm:$0xff]  }
  0xb6   :  { %1963 = vmatpush1.bf16.msra.mxu1 %v2870_v22  ;;  %1925 = vmatprep.subr.bf16.mxu0 %v2881_v25  ;;  %v2962_v22 = vld [vmem:[#allocation5 + $0x240] ss:$20 sps:$4 sm:$0xff]   ;;  %v2964_v25 = vld [vmem:[#allocation5 + $0x218] ss:$20 sps:$4 sm:$0xff]  }
  0xb7   :  { %1964 = vmatprep.subr.bf16.mxu1 %v2878_v24  ;;  %1994 = vmatprep.mubr.bf16.mxu1 %v3159_v34  ;;  %v2963_v24 = vld [vmem:[#allocation5 + $0x100] ss:$20 sps:$4 sm:$0xff]  }
  0xb9   :  { %1926 = vmatpush1.bf16.msra.mxu0 %v2879_v27  ;;  %v3020_v27 = vld [vmem:[#allocation3 + $0x4] ss:$28 sps:$4 sm:$0xff]  }
  0xba   :  { %1965 = vmatpush1.bf16.msra.mxu1 %v2876_v26  ;;  %1927 = vmatprep.subr.bf16.mxu0 %v2887_v29  ;;  %v2968_v26 = vld [vmem:[#allocation5 + $0x78c] ss:$20 sps:$4 sm:$0xff]   ;;  %v2966_v29 = vld [vmem:[#allocation5 + $0x788] ss:$20 sps:$4 sm:$0xff]  }
  0xbb   :  { %1966 = vmatprep.subr.bf16.mxu1 %v2884_v28  ;;  %v2965_v28 = vld [vmem:[#allocation5 + $0xd8] ss:$20 sps:$4 sm:$0xff]  }
  0xbd   :  { %1928 = vmatpush1.bf16.msra.mxu0 %v2885_v51  ;;  %v2971_v51 = vld [vmem:[#allocation5 + $0x4e8] ss:$20 sps:$4 sm:$0xff]  }
  0xbe   :  { %1967 = vmatpush1.bf16.msra.mxu1 %v2882_v30  ;;  %1929 = vmatprep.subr.bf16.mxu0 %v2893_v32  ;;  %v2969_v30 = vld [vmem:[#allocation5 + $0x1f0] ss:$20 sps:$4 sm:$0xff]   ;;  %v2972_v32 = vld [vmem:[#allocation5 + $0x3a8] ss:$20 sps:$4 sm:$0xff]  }
  0xbf   :  { %1968 = vmatprep.subr.bf16.mxu1 %v2890_v31  ;;  %v2973_v31 = vld [vmem:[#allocation5 + $0x1c8] ss:$20 sps:$4 sm:$0xff]  }
  0xc1   :  { %1930 = vmatpush1.bf16.msra.mxu0 %v2891_v5  ;;  %v2975_v5 = vld [vmem:[#allocation5 + $0x4c0] ss:$20 sps:$4 sm:$0xff]  }
  0xc2   :  { %1969 = vmatpush1.bf16.msra.mxu1 %v2888_v33  ;;  %1931 = vmatprep.subr.bf16.mxu0 %v2899_v36  ;;  %v2974_v33 = vld [vmem:[#allocation5 + $0x88] ss:$20 sps:$4 sm:$0xff]   ;;  %v2976_v36 = vld [vmem:[#allocation5 + $0x380] ss:$20 sps:$4 sm:$0xff]  }
  0xc3   :  { %1970 = vmatprep.subr.bf16.mxu1 %v2896_v35  ;;  %v2977_v35 = vld [vmem:[#allocation5 + $0x1a0] ss:$20 sps:$4 sm:$0xff]  }
  0xc5   :  { %1932 = vmatpush1.bf16.msra.mxu0 %v2897_v38  ;;  %v2979_v38 = vld [vmem:[#allocation5 + $0x498] ss:$20 sps:$4 sm:$0xff]  }
  0xc6   :  { %1971 = vmatpush1.bf16.msra.mxu1 %v2894_v37  ;;  %1933 = vmatprep.subr.bf16.mxu0 %v2905_v40  ;;  %v2978_v37 = vld [vmem:[#allocation5 + $0x60] ss:$20 sps:$4 sm:$0xff]   ;;  %v2980_v40 = vld [vmem:[#allocation5 + $0x358] ss:$20 sps:$4 sm:$0xff]  }
  0xc7   :  { %1972 = vmatprep.subr.bf16.mxu1 %v2902_v39  ;;  %v2981_v39 = vld [vmem:[#allocation5 + $0x178] ss:$20 sps:$4 sm:$0xff]  }
  0xc9   :  { %1934 = vmatpush1.bf16.msra.mxu0 %v2903_v42  ;;  %v2983_v42 = vld [vmem:[#allocation5 + $0x470] ss:$20 sps:$4 sm:$0xff]  }
  0xca   :  { %1973 = vmatpush1.bf16.msra.mxu1 %v2900_v41  ;;  %1935 = vmatprep.subr.bf16.mxu0 %v2911_v44  ;;  %v2982_v41 = vld [vmem:[#allocation5 + $0x38] ss:$20 sps:$4 sm:$0xff]   ;;  %v2986_v44 = vld [vmem:[#allocation5 + $0x10] ss:$20 sps:$4 sm:$0xff]  }
  0xcb   :  { %1974 = vmatprep.subr.bf16.mxu1 %v2908_v43  ;;  %v2985_v43 = vld [vmem:[#allocation5 + $0x150] ss:$20 sps:$4 sm:$0xff]  }
  0xcd   :  { %1936 = vmatpush2.bf16.msra.mxu0 %v2909_v46  ;;  %v2989_v46 = vld [vmem:[#allocation5 + $0x768] ss:$20 sps:$4 sm:$0xff]  }
  0xce   :  { %1975 = vmatpush1.bf16.msra.mxu1 %v2906_v45  ;;  %1937 = vmatprep.subr.bf16.mxu0 %v2917_v48  ;;  %v2987_v45 = vld [vmem:[#allocation5 + $0x448] ss:$20 sps:$4 sm:$0xff]  }
  0xcf   :  { %1976 = vmatprep.subr.bf16.mxu1 %v2914_v47  ;;  %v2988_v47 = vld [vmem:[#allocation5 + $0x308] ss:$20 sps:$4 sm:$0xff]  }
  0xd0   :  { %v2990_v48 = vld [vmem:[#allocation5 + $0x628] ss:$20 sps:$4 sm:$0xff]  }
  0xd1   :  { %1938 = vmatpush2.bf16.msra.mxu0 %v2915_v50  ;;  %v2993_v50 = vld [vmem:[#allocation5 + $0x740] ss:$20 sps:$4 sm:$0xff]  }
  0xd2   :  { %1977 = vmatpush1.bf16.msra.mxu1 %v2912_v49  ;;  %1939 = vmatprep.subr.bf16.mxu0 %v2923_v53  ;;  %v2991_v49 = vld [vmem:[#allocation5 + $0x420] ss:$20 sps:$4 sm:$0xff]  }
  0xd3   :  { %1978 = vmatprep.subr.bf16.mxu1 %v2920_v52  ;;  %v3022_v52 = vld [vmem:[#allocation3] ss:$28 sps:$4 sm:$0xff]   ;;  %v2992_v53 = vld [vmem:[#allocation5 + $0x2e0] ss:$20 sps:$4 sm:$0xff]  }
  0xd5   :  { %1940 = vmatpush2.bf16.msra.mxu0 %v2921_v55  ;;  %v2995_v55 = vld [vmem:[#allocation5 + $0x3f8] ss:$20 sps:$4 sm:$0xff]  }
  0xd6   :  { %1979 = vmatpush2.bf16.msra.mxu1 %v2918_v54  ;;  %1941 = vmatprep.subr.bf16.mxu0 %v2929_v57  ;;  %v2994_v54 = vld [vmem:[#allocation5 + $0x600] ss:$20 sps:$4 sm:$0xff]   ;;  %v2996_v57 = vld [vmem:[#allocation5 + $0x2b8] ss:$20 sps:$4 sm:$0xff]  }
  0xd7   :  { %1980 = vmatprep.subr.bf16.mxu1 %v2926_v56  ;;  %v2997_v56 = vld [vmem:[#allocation5 + $0x718] ss:$20 sps:$4 sm:$0xff]  }
  0xd9   :  { %1942 = vmatpush2.bf16.msra.mxu0 %v2927_v59  ;;  %v2999_v59 = vld [vmem:[#allocation5 + $0x3d0] ss:$20 sps:$4 sm:$0xff]  }
  0xda   :  { %1981 = vmatpush2.bf16.msra.mxu1 %v2924_v58  ;;  %1943 = vmatprep.subr.bf16.mxu0 %v2935_v61  ;;  %v2998_v58 = vld [vmem:[#allocation5 + $0x5d8] ss:$20 sps:$4 sm:$0xff]   ;;  %v3000_v61 = vld [vmem:[#allocation5 + $0x290] ss:$20 sps:$4 sm:$0xff]  }
  0xdb   :  { %1982 = vmatprep.subr.bf16.mxu1 %v2932_v60  ;;  %v3001_v60 = vld [vmem:[#allocation5 + $0x6f0] ss:$20 sps:$4 sm:$0xff]  }
  0xdd   :  { %1944 = vmatpush2.bf16.msra.mxu0 %v2933_v63  ;;  %v3003_v63 = vld [vmem:[#allocation5 + $0x6c8] ss:$20 sps:$4 sm:$0xff]  }
  0xde   :  { %1983 = vmatpush2.bf16.msra.mxu1 %v2930_v62  ;;  %1945 = vmatprep.subr.bf16.mxu0 %v2941_v1  ;;  %v3002_v62 = vld [vmem:[#allocation5 + $0x5b0] ss:$20 sps:$4 sm:$0xff]  }
  0xdf   :  { %1984 = vmatprep.subr.bf16.mxu1 %v2938_v0  ;;  %v3004_v0 = vld [vmem:[#allocation5 + $0x588] ss:$20 sps:$4 sm:$0xff]   ;;  %v3011_v1 = vld [vmem:[#allocation5 + $0x790] ss:$20 sps:$4 sm:$0xff]  }
  0xe1   :  { %1946 = vmatpush2.bf16.msra.mxu0 %v2939_v3  ;;  %v3023_v3 = vld [vmem:[#allocation3 + $0x8] ss:$28 sps:$4 sm:$0xff]  }
  0xe2   :  { %1985 = vmatpush2.bf16.msra.mxu1 %v2936_v2  ;;  %1947 = vmatprep.subr.bf16.mxu0 %v2947_v7  ;;  %v3097_v2 = vmov 0.0   ;;  %v3007_v7 = vld [vmem:[#allocation5 + $0x678] ss:$20 sps:$4 sm:$0xff]  }
  0xe3   :  { %1986 = vmatprep.subr.bf16.mxu1 %v2944_v4  ;;  %v3006_v4 = vld [vmem:[#allocation5 + $0x560] ss:$20 sps:$4 sm:$0xff]  }
  0xe5   :  { %1948 = vmatpush2.bf16.msra.mxu0 %v2945_v9  ;;  %v3009_v9 = vld [vmem:[#allocation5 + $0x650] ss:$20 sps:$4 sm:$0xff]  }
  0xe6   :  { %1987 = vmatpush2.bf16.msra.mxu1 %v2942_v8  ;;  %1949 = vmatprep.subr.bf16.mxu0 %v2953_v13  ;;  %v3008_v8 = vld [vmem:[#allocation5 + $0x538] ss:$20 sps:$4 sm:$0xff]   ;;  %v3010_v13 = vld [vmem:[#allocation5 + $0x510] ss:$20 sps:$4 sm:$0xff]  }
  0xe7   :  { %1988 = vmatprep.subr.bf16.mxu1 %v2950_v10  ;;  %v3024_v10 = vld [vmem:[#allocation3 + $0x18] ss:$28 sps:$4 sm:$0xff]  }
  0xe9   :  { %1950 = vmatpush2.bf16.msra.mxu0 %v2951_v16 }
  0xea   :  { %1989 = vmatpush2.bf16.msra.mxu1 %v2948_v14  ;;  %2575 = vmatprep.subr.bf16.mxu0 %v2957_v18 }
  0xeb   :  { %1990 = vmatprep.subr.bf16.mxu1 %v2956_v17 }
  0xec   :  { %1952 = vmatmul.mubr.bf16.vlgmr.msra.gmra.mxu0 %v3149_v6  ;;  %v2970_v6 = vld [vmem:[#allocation5 + $0xb0] ss:$20 sps:$4 sm:$0xff]  }
  0xed   :  { %2576 = vmatpush3.bf16.msra.mxu0 %v2958_v20  ;;  %2080 = vmatprep.mubr.bf16.mxu0 %v3020_v27 }
  0xee   :  { %1991 = vmatpush2.bf16.msra.mxu1 %v2954_v19  ;;  %2577 = vmatprep.subr.bf16.mxu0 %v2962_v22 }
  0xef   :  { %1992 = vmatprep.subr.bf16.mxu1 %v2961_v21 }
  0xf1   :  { %2578 = vmatpush3.bf16.msra.mxu0 %v2963_v24 }
  0xf2   :  { %1993 = vmatpush2.bf16.msra.mxu1 %v2959_v23  ;;  %2579 = vmatprep.subr.bf16.mxu0 %v2964_v25 }
  0xf3   :  { %2019 = vmatprep.subr.bf16.mxu1 %v2968_v26 }
  0xf5   :  { %1995 = vmatmul.mubr.bf16.vlgmr.msra.gmra.mxu1 %v3162_v11  ;;  %2580 = vmatpush3.bf16.msra.mxu0 %v2965_v28 }
  0xf6   :  { %2020 = vmatpush1.bf16.msra.mxu1 %v2966_v29  ;;  %2581 = vmatprep.subr.bf16.mxu0 %v2969_v30 }
  0xf7   :  { %2037 = vmatprep.mubr.bf16.mxu1 %v3096_v12  ;;  %2597 = vmatprep.subr.bf16.mxu1 %v2971_v51  ;;  %v3021_v12 = vld [vmem:[#allocation3 + $0xc] ss:$28 sps:$4 sm:$0xff]  }
  0xf9   :  { %2582 = vmatpush3.bf16.msra.mxu0 %v2970_v6 }
  0xfa   :  { %2583 = vmatprep.subr.bf16.mxu0 %v2973_v31 }
  0xfd   :  { %2572 = vmatmul.mubr.msk.bf16.vlgmr.msra.gmra.mxu1 %vm1700_vm0, %v3154_v15  ;;  %2584 = vmatpush3.bf16.msra.mxu0 %v2974_v33  ;;  %v2984_v15 = vld [vmem:[#allocation5 + $0x330] ss:$20 sps:$4 sm:$0xff]   ;;  %v366_v33 = vlaneseq }
  0xfe   :  { %2598 = vmatpush3.bf16.msra.mxu1 %v2972_v32  ;;  %2585 = vmatprep.subr.bf16.mxu0 %v2977_v35 }
  0xff   :  { %2599 = vmatprep.subr.bf16.mxu1 %v2975_v5  ;;  %2121 = vmatprep.mubr.bf16.mxu1 %v3021_v12  ;;  %v364_v12 = vld [vmem:[%s3244_s2] sm:$0x1f] }
 0x101   :  { %2586 = vmatpush3.bf16.msra.mxu0 %v2978_v37 }
 0x102   :  { %2600 = vmatpush3.bf16.msra.mxu1 %v2976_v36  ;;  %2587 = vmatprep.subr.bf16.mxu0 %v2981_v39  ;;  %v3186_v36 = vshrl.u32 %v366_v33, 7 }
 0x103   :  { %2601 = vmatprep.subr.bf16.mxu1 %v2979_v38 }
 0x104   :  { %v368_v39 = vsub.s32 0, %v3186_v36 }
 0x105   :  { %2588 = vmatpush3.bf16.msra.mxu0 %v2982_v41 }
 0x106   :  { %2602 = vmatpush3.bf16.msra.mxu1 %v2980_v40  ;;  %2589 = vmatprep.subr.bf16.mxu0 %v2985_v43  ;;  %v372_v40 = vsub.s32 1, %v3186_v36  ;;  %v369_v43 = vrot.slane %v364_v12, %v368_v39 }
 0x107   :  { %2603 = vmatprep.subr.bf16.mxu1 %v2983_v42 }
 0x109   :  { %2590 = vmatpush3.bf16.msra.mxu0 %v2986_v44 }
 0x10a   :  { %2604 = vmatpush3.bf16.msra.mxu1 %v2984_v15  ;;  %2619 = vmatprep.subr.bf16.mxu0 %v2989_v46  ;;  %v373_v15 = vrot.slane %v364_v12, %v372_v40 }
 0x10b   :  { %2605 = vmatprep.subr.bf16.mxu1 %v2987_v45  ;;  %v376_v45 = vsub.s32 2, %v3186_v36 }
 0x10c   :  { %2081 = vmatmul.mubr.bf16.vlgmr.msra.gmra.mxu0 %v3022_v52  ;;  %v380_v52 = vsub.s32 3, %v3186_v36 }
 0x10d   :  { %2620 = vmatpush3.bf16.msra.mxu0 %v2990_v48  ;;  %2162 = vmatprep.mubr.bf16.mxu0 %v3159_v34  ;;  %v3005_v34 = vld [vmem:[#allocation5 + $0x6a0] ss:$20 sps:$4 sm:$0xff]  }
 0x10e   :  { %2606 = vmatpush3.bf16.msra.mxu1 %v2988_v47  ;;  %2621 = vmatprep.subr.bf16.mxu0 %v2993_v50  ;;  %v377_v50 = vrot.slane %v364_v12, %v376_v45 }
 0x10f   :  { %2607 = vmatprep.subr.bf16.mxu1 %v2991_v49 }
 0x111   :  { %2622 = vmatpush3.bf16.msra.mxu0 %v2994_v54 }
 0x112   :  { %2608 = vmatpush3.bf16.msra.mxu1 %v2992_v53  ;;  %2623 = vmatprep.subr.bf16.mxu0 %v2997_v56 }
 0x113   :  { %2609 = vmatprep.subr.bf16.mxu1 %v2995_v55 }
 0x115   :  { %2624 = vmatpush3.bf16.msra.mxu0 %v2998_v58 }
 0x116   :  { %2610 = vmatpush3.bf16.msra.mxu1 %v2996_v57  ;;  %2625 = vmatprep.subr.bf16.mxu0 %v3001_v60 }
 0x117   :  { %2611 = vmatprep.subr.bf16.mxu1 %v2999_v59 }
 0x119   :  { %2626 = vmatpush3.bf16.msra.mxu0 %v3002_v62 }
 0x11a   :  { %2612 = vmatpush3.bf16.msra.mxu1 %v3000_v61  ;;  %2627 = vmatprep.subr.bf16.mxu0 %v3003_v63  ;;  %v381_v63 = vrot.slane %v364_v12, %v380_v52 }
 0x11b   :  { %2643 = vmatprep.subr.bf16.mxu1 %v3097_v2 }
 0x11d   :  { %2122 = vmatmul.mubr.bf16.vlgmr.msra.gmra.mxu1 %v3023_v3  ;;  %2628 = vmatpush3.bf16.msra.mxu0 %v3004_v0 }
 0x11e   :  { %2644 = vmatpush3.bf16.msra.mxu1 %v3011_v1  ;;  %2629 = vmatprep.subr.bf16.mxu0 %v3005_v34 }
 0x11f   :  { %2645 = vmatprep.mubr.msk.bf16.mxu1 %vm3098_vm1, %v3097_v2 }
 0x121   :  { %2630 = vmatpush3.bf16.msra.mxu0 %v3006_v4 }
 0x122   :  { %2631 = vmatprep.subr.bf16.mxu0 %v3007_v7 }
 0x125   :  { %2646 = vmatmul.mubr.msk.bf16.vlgmr.msra.gmra.mxu1 %vm1700_vm0, %v3024_v10  ;;  %2632 = vmatpush3.bf16.msra.mxu0 %v3008_v8  ;;  %v3203_v8 = vld [vmem:[#allocation7] sm:$0x1f] }
 0x126   :  { %2633 = vmatprep.subr.bf16.mxu0 %v3009_v9 }
 0x129   :  { %2634 = vmatpush3.bf16.msra.mxu0 %v3010_v13 }
 0x12c   :  { %2163 = vmatmul.mubr.bf16.vlgmr.msra.gmra.mxu0 %v3162_v11  ;;  %v1738_v24 = vpop.f32.mrf.mxu0 }
 0x12d   :  { %v1781_v14 = vpop.f32.mrf.mxu1  ;;  %v1739_v47 = vadd.f32 %v1738_v24, %v369_v43 }
 0x12e   :  { %v1740_v26 = vpop.f32.mrf.mxu0 }
 0x12f   :  { %v1783_v16 = vpop.f32.mrf.mxu1  ;;  %v1741_v48 = vadd.f32 %v1740_v26, %v373_v15  ;;  %v1782_v54 = vadd.f32 %v1781_v14, %v1739_v47 }
 0x130   :  { %v1742_v28 = vpop.f32.mrf.mxu0 }
 0x131   :  { %v1785_v17 = vpop.f32.mrf.mxu1  ;;  %v1743_v55 = vadd.f32 %v1742_v28, %v369_v43  ;;  %v1784_v56 = vadd.f32 %v1783_v16, %v1741_v48 }
 0x132   :  { %v1744_v11 = vpop.f32.mrf.mxu0 }
 0x133   :  { %v1787_v18 = vpop.f32.mrf.mxu1  ;;  %v1745_v59 = vadd.f32 %v1744_v11, %v373_v15  ;;  %v1786_v34 = vadd.f32 %v1785_v17, %v1743_v55 }
 0x135   :  { %v1867_v19 = vpop.f32.mrf.mxu1  ;;  %v1788_v4 = vadd.f32 %v1787_v18, %v1745_v59 }
 0x137   :  { %v1869_v20 = vpop.f32.mrf.mxu1 }
 0x139   :  { %v3176_v21 = vpop.f32.mrf.mxu1 }
 0x13b   :  { %v3178_v22 = vpop.f32.mrf.mxu1 }
 0x16c   :  { %v1824_v51 = vpop.f32.mrf.mxu0 }
 0x16d   :  { %v1825_v60 = vadd.f32 %v1824_v51, %v1782_v54  ;;  %v384_v51 = vsub.s32 4, %v3186_v36 }
 0x16e   :  { %v1826_v31 = vpop.f32.mrf.mxu0 }
 0x16f   :  { %v1827_v61 = vadd.f32 %v1826_v31, %v1784_v56  ;;  %v1868_v7 = vadd.f32 %v1867_v19, %v1825_v60  ;;  %v3209_v31 = vrot.slane %v3203_v8, %v368_v39  ;;  %v385_v15 = vrot.slane %v364_v12, %v384_v51 }
 0x170   :  { %v1828_v5 = vpop.f32.mrf.mxu0 }
 0x171   :  { %v1870_v9 = vadd.f32 %v1869_v20, %v1827_v61  ;;  %v1829_v10 = vadd.f32 %v1828_v5, %v1786_v34  ;;  %vm2212_vm2 = vcmp.gt.f32.partialorder %v1868_v7, 0.0  ;;  %v2222_v19 = vmul.f32 0.01, %v1868_v7 }
 0x172   :  { %v1830_v37 = vpop.f32.mrf.mxu0 }
 0x173   :  { %v2223_v20 = vmul.f32 0.01, %v1870_v9  ;;  %vm2213_vm3 = vcmp.gt.f32.partialorder %v1870_v9, 0.0  ;;  %v2232_v48 = vsel %vm2212_vm2, %v1868_v7, %v2222_v19 }
 0x175   :  { %v1910_v23 = vpop.f32.mrf.mxu1 }
 0x176   :  { %v1911_v62 = vadd.f32 %v1910_v23, %v377_v50  ;;  %v1831_v23 = vadd.f32 %v1830_v37, %v1788_v4 }
 0x177   :  { %v1912_v25 = vpop.f32.mrf.mxu1 }
 0x178   :  { %v1913_v13 = vadd.f32 %v1912_v25, %v381_v63  ;;  %v1872_v25 = vadd.f32 %v3176_v21, %v1829_v10 }
 0x179   :  { %v1914_v27 = vpop.f32.mrf.mxu1 }
 0x17a   :  { %v1915_v26 = vadd.f32 %v1914_v27, %v377_v50  ;;  %v1874_v27 = vadd.f32 %v3178_v22, %v1831_v23  ;;  %vm2217_vm5 = vcmp.gt.f32.partialorder %v1872_v25, 0.0  ;;  %v2255_v22 = vrot.slane %v3203_v8, %v376_v45 }
 0x17b   :  { %v3180_v29 = vpop.f32.mrf.mxu1  ;;  %v2259_v45 = vrot.slane %v3203_v8, %v380_v52 }
 0x17c   :  { %v1917_v37 = vadd.f32 %v3180_v29, %v381_v63  ;;  %vm2218_vm6 = vcmp.gt.f32.partialorder %v1874_v27, 0.0 }
 0x1ac   :  { %v1953_v41 = vpop.f32.mrf.mxu0 }
 0x1ad   :  { %v1954_v2 = vadd.f32 %v1953_v41, %v1911_v62  ;;  %v2251_v41 = vrot.slane %v3203_v8, %v372_v40  ;;  %v2227_v40 = vmul.f32 0.01, %v1872_v25 }
 0x1ae   :  { %v1955_v44 = vpop.f32.mrf.mxu0 }
 0x1af   :  { %v1956_v28 = vadd.f32 %v1955_v44, %v1913_v13 }
 0x1b0   :  { %v1957_v49 = vpop.f32.mrf.mxu0 }
 0x1b1   :  { %v1958_v18 = vadd.f32 %v1957_v49, %v1915_v26  ;;  %v2233_v49 = vsel %vm2213_vm3, %v1870_v9, %v2223_v20  ;;  %v2263_v26 = vrot.slane %v3203_v8, %v384_v51 }
 0x1b2   :  { %v1959_v57 = vpop.f32.mrf.mxu0  ;;  %v2270_v62 = vmul.f32 %v2251_v41, %v2233_v49 }
 0x1b3   :  { %v1960_v47 = vadd.f32 %v1959_v57, %v1917_v37 }
 0x1b5   :  { %v1996_v30 = vpop.f32.mrf.mxu1 }
 0x1b6   :  { %v1997_v14 = vadd.f32 %v1996_v30, %v1954_v2 }
 0x1b7   :  { %v1998_v6 = vpop.f32.mrf.mxu1 }
 0x1b8   :  { %v1999_v30 = vadd.f32 %v1998_v6, %v1956_v28 }
 0x1b9   :  { %v3182_v32 = vpop.f32.mrf.mxu1 }
 0x1bb   :  { %v3184_v35 = vpop.f32.mrf.mxu1 }
 0x1bc   :  { %v2003_v50 = vadd.f32 %v3184_v35, %v1960_v47 }
 0x1bd   :  { %v2039_v38 = vpop.f32.mrf.mxu1 }
 0x1be   :  { %v2040_v11 = vadd.f32 %v2039_v38, %v1997_v14  ;;  %v2001_v38 = vadd.f32 %v3182_v32, %v1958_v18 }
 0x1bf   :  { %v2041_v42 = vpop.f32.mrf.mxu1 }
 0x1c0   :  { %v2224_v39 = vmul.f32 0.01, %v2040_v11  ;;  %v2042_v43 = vadd.f32 %v2041_v42, %v1999_v30  ;;  %vm2214_vm4 = vcmp.gt.f32.partialorder %v2040_v11, 0.0  ;;  %v2228_v42 = vmul.f32 0.01, %v1874_v27 }
 0x1c1   :  { %v2043_v46 = vpop.f32.mrf.mxu1 }
 0x1c2   :  { %v2044_v21 = vadd.f32 %v2043_v46, %v2001_v38  ;;  %v2234_v54 = vsel %vm2214_vm4, %v2040_v11, %v2224_v39  ;;  %vm2215_vm7 = vcmp.gt.f32.partialorder %v2042_v43, 0.0  ;;  %v2225_v46 = vmul.f32 0.01, %v2042_v43 }
 0x1c3   :  { %v3197_v53 = vpop.f32.mrf.mxu1  ;;  %v2238_v63 = vsel %vm2218_vm6, %v1874_v27, %v2228_v42  ;;  %v2271_v4 = vmul.f32 %v2255_v22, %v2234_v54 }
 0x1c4   :  { %v2229_v56 = vmul.f32 0.01, %v2044_v21  ;;  %v2046_v57 = vadd.f32 %v3197_v53, %v2003_v50  ;;  %vm2219_vm8 = vcmp.gt.f32.partialorder %v2044_v21, 0.0  ;;  %v2235_v2 = vsel %vm2215_vm7, %v2042_v43, %v2225_v46 }
 0x1c5   :  { %v2269_v53 = vmul.f32 %v3209_v31, %v2232_v48  ;;  %v2275_v14 = vmul.f32 %v2251_v41, %v2238_v63  ;;  %v2272_v18 = vmul.f32 %v2259_v45, %v2235_v2 }
 0x1c6   :  { %v2239_v7 = vsel %vm2219_vm8, %v2044_v21, %v2229_v56  ;;  %v2230_v9 = vmul.f32 0.01, %v2046_v57  ;;  %vm2220_vm9 = vcmp.gt.f32.partialorder %v2046_v57, 0.0 }
 0x1c7   :  { %v2276_v11 = vmul.f32 %v2255_v22, %v2239_v7 }
 0x1c8   :  { %v2240_v20 = vsel %vm2220_vm9, %v2046_v57, %v2230_v9 }
 0x1cc   :  { %v2591_v0 = vpop.f32.mrf.mxu0 }
 0x1ce   :  { %v2592_v16 = vpop.f32.mrf.mxu0 }
 0x1cf   :  { %v2593_v6 = vadd.f32 %v2592_v16, %v2591_v0  ;;  %v2279_v16 = vadd.f32 %v2270_v62, %v2269_v53 }
 0x1d0   :  { %v2594_v33 = vpop.f32.mrf.mxu0 }
 0x1d1   :  { %v2083_v59 = vadd.f32 %v2593_v6, %v385_v15  ;;  %v2280_v19 = vadd.f32 %v2279_v16, %v2271_v4 }
 0x1d2   :  { %v2595_v29 = vpop.f32.mrf.mxu0 }
 0x1d3   :  { %v2596_v60 = vadd.f32 %v2595_v29, %v2594_v33  ;;  %v2281_v38 = vadd.f32 %v2280_v19, %v2272_v18 }
 0x1d5   :  { %v2086_v10 = vadd.f32 %v2596_v60, %v385_v15  ;;  %v2574_v15 = vld [vmem:[#allocation2] ss:$0 sm:$0xff] }
 0x1dd   :  { %v2613_v58 = vpop.f32.mrf.mxu1 }
 0x1df   :  { %v2614_v1 = vpop.f32.mrf.mxu1 }
 0x1e0   :  { %v2615_v12 = vadd.f32 %v2614_v1, %v2613_v58  ;;  %v2237_v1 = vsel %vm2217_vm5, %v1872_v25, %v2227_v40 }
 0x1e1   :  { %v3201_v3 = vpop.f32.mrf.mxu1  ;;  %v2274_v28 = vmul.f32 %v3209_v31, %v2237_v1 }
 0x1e2   :  { %v2124_v35 = vadd.f32 %v2615_v12, %v2083_v59 }
 0x1e3   :  { %v2617_v24 = vpop.f32.mrf.mxu1  ;;  %v2285_v33 = vadd.f32 %v2275_v14, %v2274_v28 }
 0x1e4   :  { %v2618_v58 = vadd.f32 %v2617_v24, %v3201_v3 }
 0x1e5   :  { %v3206_v17 = vpop.f32.mrf.mxu1  ;;  %v2286_v41 = vadd.f32 %v2285_v33, %v2276_v11 }
 0x1e6   :  { %v2127_v23 = vadd.f32 %v2618_v58, %v2086_v10 }
 0x1e7   :  { %v2647_v5 = vpop.f32.mrf.mxu1 }
 0x1e9   :  { %v2208_v44 = vpop.f32.mrf.mxu1 }
 0x1eb   :  { %v2648_v32 = vpop.f32.mrf.mxu1 }
 0x1ec   :  { %v2635_v55 = vpop.f32.mrf.mxu0 }
 0x1ee   :  { %v2636_v61 = vpop.f32.mrf.mxu0 }
 0x1ef   :  { %v2637_v0 = vadd.f32 %v2636_v61, %v2635_v55 }
 0x1f0   :  { %v2638_v34 = vpop.f32.mrf.mxu0 }
 0x1f1   :  { %v2165_v13 = vadd.f32 %v2637_v0, %v2124_v35 }
 0x1f2   :  { %v2639_v52 = vpop.f32.mrf.mxu0 }
 0x1f3   :  { %v2206_v3 = vadd.f32 %v3206_v17, %v2165_v13  ;;  %v2640_v24 = vadd.f32 %v2639_v52, %v2638_v34  ;;  %v2277_v17 = vmul.f32 %v2259_v45, %v2240_v20 }
 0x1f5   :  { %v2168_v25 = vadd.f32 %v2640_v24, %v2127_v23  ;;  %vm2216_vm10 = vcmp.gt.f32.partialorder %v2206_v3, 0.0  ;;  %v2226_v30 = vmul.f32 0.01, %v2206_v3  ;;  %v2287_v31 = vadd.f32 %v2286_v41, %v2277_v17 }
 0x1f7   :  { %v2209_v5 = vadd.f32 %v2208_v44, %v2168_v25  ;;  %v2236_v27 = vsel %vm2216_vm10, %v2206_v3, %v2226_v30 }
 0x1f8   :  { %v2273_v37 = vmul.f32 %v2263_v26, %v2236_v27 }
 0x1f9   :  { %vm2221_vm11 = vcmp.gt.f32.partialorder %v2209_v5, 0.0  ;;  %v2231_v36 = vmul.f32 0.01, %v2209_v5 }
 0x1fa   :  { %v2282_v39 = vadd.f32 %v2281_v38, %v2273_v37 }
 0x1fb   :  { %v2241_v8 = vsel %vm2221_vm11, %v2209_v5, %v2231_v36 }
 0x1fc   :  { %2283 = vadd.xlane.f32.xlu0 %v2282_v39  ;;  %v2278_v51 = vmul.f32 %v2263_v26, %v2241_v8 }
 0x1fe   :  { %v2288_v43 = vadd.f32 %v2287_v31, %v2278_v51 }
 0x200   :  { %2289 = vadd.xlane.f32.xlu0 %v2288_v43 }
 0x285   :  { %v2284_v47 = vpop.xlane.xlu0 %2283 }
 0x286   :  { %v2298_v21 = vadd.f32 %v2574_v15, %v2284_v47 }
 0x288   :  { %v2300_v6 = vsub.f32 0.0, %v2298_v21 }
 0x289   :  { %v2290_v48 = vpop.xlane.xlu0 %2289 }
 0x28a   :  { %v2302_v44 = vmul.f32 1.442695, %v2300_v6  ;;  %v2299_v49 = vadd.f32 %v2574_v15, %v2290_v48 }
 0x28c   :  { %3012 = vpow2.f32 %v2302_v44  ;;  %v2301_v22 = vsub.f32 0.0, %v2299_v49 }
 0x28e   :  { %v2304_v29 = vmul.f32 1.442695, %v2301_v22 }
 0x290   :  { %3014 = vpow2.f32 %v2304_v29 }
 0x299   :  { %v3013_v32 = vpop.eup %3012 }
 0x29a   :  { %v2306_v40 = vadd.f32 1.0, %v3013_v32 }
 0x29c   :  { %3016 = vrcp.f32 %v2306_v40 }
 0x29d   :  { %v3015_v42 = vpop.eup %3014 }
 0x29e   :  { %v2307_v50 = vadd.f32 1.0, %v3015_v42 }
 0x2a0   :  { %3018 = vrcp.f32 %v2307_v50 }
 0x2a9   :  { %v3017_v12 = vpop.eup %3016 }
 0x2aa   :  { %2311 = vst.msk [vmem:[%s3247_s5] sm:$0xff] %vm2310_vm12, %v3017_v12 }
 0x2ad   :  { %v3019_v54 = vpop.eup %3018 }
 0x2ae   :  { %2312 = vst.msk [vmem:[%s3247_s5 + $0x8] sm:$0xff] %vm2310_vm12, %v3019_v54 }
 0x2af   :  { %2317 = vsyncpa [#allocation4], 1 }
 0x2b0   :  { %2318 = vsyncpa [#allocation6], 1 }

</bundles_post_ra>
